<compile_context>
chip_gen: v6e
topology: v6e:2x2x1
jax: 0.10.0
libtpu: 0.0.40
codegen_flags: <defaults>
</compile_context>

<pallas_src>
import functools

import jax
import jax.numpy as jnp
from jax.experimental import pallas as pl
from jax.experimental.pallas import tpu as pltpu

LANE = 128
MAX_TILE_ROWS = 2048   # 1 MiB per f32 input tile; multiple of 8
NUM_CORES = 2          # shard row-tiles across TensorCores (no-op on 1-TC chips)


def _bce_kernel(x_ref, t_ref, o_ref, *, steps, row_tiles, tile_rows,
                last_rows, has_partial, has_dup):
    c = pl.program_id(0)   # parallel (core) axis
    i = pl.program_id(1)   # arbitrary (reduction) axis

    @pl.when(i == 0)
    def _():
        o_ref[...] = jnp.zeros_like(o_ref)

    tile_idx = c * steps + i

    def tile_loss():
        x = x_ref[...].astype(jnp.float32)
        t = t_ref[...].astype(jnp.float32)
        # BCE-with-logits, single-softplus stable identity:
        #   loss = max(x, 0) - t*x + log1p(exp(-|x|))
        return jnp.maximum(x, 0.0) - t * x + jnp.log1p(jnp.exp(-jnp.abs(x)))

    def accumulate(loss):
        # Accumulate into the resident (8, 128) vreg-shaped output block
        # (pure VPU adds; final cross-lane reduce happens in the wrapper).
        if tile_rows % 8 == 0:
            o_ref[...] += loss.reshape(tile_rows // 8, 8, LANE).sum(axis=0)
        else:
            # tiny-input path: a single full-extent tile with rows % 8 != 0
            row_sum = jnp.sum(loss, axis=0, keepdims=True)           # (1, LANE)
            sub = jax.lax.broadcasted_iota(jnp.int32, (8, LANE), 0)
            o_ref[...] += jnp.where(sub == 0, row_sum, 0.0)

    # ---- Fast path: full interior tiles, no masking (the common case). ----
    def full_tile():
        accumulate(tile_loss())

    n_full = row_tiles - 1 if has_partial else row_tiles
    if has_partial or has_dup:
        pl.when(tile_idx < n_full)(full_tile)
    else:
        full_tile()

    # ---- Slow path: the single ragged last tile (row-mask only; the input
    # slab is lane-aligned by construction). Clamped duplicate tiles fall
    # through both branches and do no compute. ----
    if has_partial:
        @pl.when(tile_idx == row_tiles - 1)
        def _():
            loss = tile_loss()
            row_ids = jax.lax.broadcasted_iota(jnp.int32, (tile_rows, LANE), 0)
            accumulate(jnp.where(row_ids < last_rows, loss, 0.0))


def bce_loss_2d(logits, targets):
    """Equivalent of BCELoss2d().forward(logits, targets) -> scalar f32 mean."""
    assert logits.shape == targets.shape
    n = logits.size
    assert n > 0

    x_flat = logits.reshape(-1)
    t_flat = targets.reshape(-1)

    inv_n = 1.0 / float(n)
    main = (n // LANE) * LANE

    # <128-element ragged tail: reduce in plain JAX (avoids a padded copy of
    # the big arrays and any in-kernel lane masking).
    tail_sum = None
    if main < n:
        xt = x_flat[main:].astype(jnp.float32)
        tt = t_flat[main:].astype(jnp.float32)
        tail_sum = jnp.sum(jnp.maximum(xt, 0.0) - tt * xt
                           + jnp.log1p(jnp.exp(-jnp.abs(xt))))
    if main == 0:
        return tail_sum * inv_n

    rows = main // LANE
    x2 = (x_flat[:main] if main < n else x_flat).reshape(rows, LANE)
    t2 = (t_flat[:main] if main < n else t_flat).reshape(rows, LANE)

    # Tile rows: full extent for small inputs, else a large 8-aligned tile.
    tile_rows = rows if rows <= MAX_TILE_ROWS else MAX_TILE_ROWS
    row_tiles = pl.cdiv(rows, tile_rows)
    last_rows = rows - (row_tiles - 1) * tile_rows      # rows in last tile
    has_partial = last_rows != tile_rows

    # Only split across TensorCores when there is enough work for it to
    # matter (v7x); on 1-TC v5e/v6e the core axis is just a serial loop and
    # small inputs should never schedule a duplicate tile.
    num_cores = NUM_CORES if row_tiles >= 4 else 1
    steps = pl.cdiv(row_tiles, num_cores)
    has_dup = num_cores * steps > row_tiles
    last_tile = row_tiles - 1

    def in_map(c, i):
        # Clamp any duplicated trailing tile: it is skipped in-kernel, and the
        # unchanged block index lets the pipeline skip its re-fetch.
        return (jnp.minimum(c * steps + i, last_tile), 0)

    kernel = functools.partial(
        _bce_kernel, steps=steps, row_tiles=row_tiles, tile_rows=tile_rows,
        last_rows=last_rows, has_partial=has_partial, has_dup=has_dup)

    partials = pl.pallas_call(
        kernel,
        out_shape=jax.ShapeDtypeStruct((num_cores * 8, LANE), jnp.float32),
        grid_spec=pltpu.PrefetchScalarGridSpec(
            num_scalar_prefetch=0,
            grid=(num_cores, steps),
            in_specs=[
                pl.BlockSpec((tile_rows, LANE), in_map),
                pl.BlockSpec((tile_rows, LANE), in_map),
            ],
            out_specs=pl.BlockSpec((8, LANE), lambda c, i: (c, 0)),
        ),
        compiler_params=pltpu.CompilerParams(
            dimension_semantics=("parallel", "arbitrary"),
        ),
    )(x2, t2)

    # Tiny final reduce of the per-core (8,128) partials + mean scaling.
    total = jnp.sum(partials)
    if tail_sum is not None:
        total = total + tail_sum
    return total * inv_n


if __name__ == "__main__":
    key = jax.random.PRNGKey(0)
    k1, k2, k3, k4, k5, k6 = jax.random.split(key, 6)

    def reference(lg, tg):
        p = jax.nn.sigmoid(lg.astype(jnp.float32)).reshape(-1)
        tt = tg.astype(jnp.float32).reshape(-1)
        return -jnp.mean(tt * jnp.log(p) + (1.0 - tt) * jnp.log1p(-p))

    # 1) small NCHW, lane-aligned (2*4*16*16 = 2048 elements -> single tile)
    logits = jax.random.normal(k1, (2, 4, 16, 16), dtype=jnp.float32)
    targets = (jax.random.uniform(k2, (2, 4, 16, 16)) > 0.5).astype(jnp.float32)
    loss = bce_loss_2d(logits, targets)
    jax.block_until_ready(loss)
    assert jnp.allclose(loss, reference(logits, targets), atol=1e-5, rtol=1e-5), \
        (loss, reference(logits, targets))

    # 2) ragged element count (210, not a multiple of 128) -> JAX tail path
    lr = jax.random.normal(k3, (2, 3, 7, 5), dtype=jnp.float32)
    tr = (jax.random.uniform(k4, (2, 3, 7, 5)) > 0.5).astype(jnp.float32)
    loss_r = bce_loss_2d(lr, tr)
    jax.block_until_ready(loss_r)
    assert jnp.allclose(loss_r, reference(lr, tr), atol=1e-5, rtol=1e-5), \
        (loss_r, reference(lr, tr))

    # 3) bf16 inputs pass through natively (upcast happens inside the kernel)
    lb = logits.astype(jnp.bfloat16)
    tb = targets.astype(jnp.bfloat16)
    loss_b = bce_loss_2d(lb, tb)
    jax.block_until_ready(loss_b)
    assert jnp.allclose(loss_b, reference(lb, tb), atol=1e-3, rtol=1e-3), \
        (loss_b, reference(lb, tb))

    # 4) multi-tile case: 5 row-tiles -> 2-core split, odd tile count (clamped
    #    duplicate tile, compute-skipped) and a masked partial last tile.
    #    4*2073*128 = 1,061,376 elements -> rows = 8292 = 4*2048 + 100.
    lm = jax.random.normal(k5, (4, 2073, 128), dtype=jnp.float32)
    tm = (jax.random.uniform(k6, (4, 2073, 128)) > 0.5).astype(jnp.float32)
    loss_m = bce_loss_2d(lm, tm)
    jax.block_until_ready(loss_m)
    assert jnp.allclose(loss_m, reference(lm, tm), atol=1e-5, rtol=1e-4), \
        (loss_m, reference(lm, tm))

    print("KERNEL_OK")
</pallas_src>

<mosaic_0001>
module attributes {stable_mosaic.version = 11 : i64} {
  func.func @_bce_kernel(%arg0: i32, %arg1: i32, %arg2: memref<16x128xf32, #tpu.memory_space<vmem>>, %arg3: memref<16x128xf32, #tpu.memory_space<vmem>>, %arg4: memref<8x128xf32, #tpu.memory_space<vmem>>) attributes {dimension_semantics = [#tpu.dimension_semantics<parallel>, #tpu.dimension_semantics<arbitrary>], iteration_bounds = array<i64: 1, 1>, scalar_prefetch = 0 : i64, scratch_operands = 0 : i64, tpu.core_type = #tpu.core_type<tc>, window_params = [{transform_indices = @transform_0, window_bounds = array<i64: 16, 128>}, {transform_indices = @transform_1, window_bounds = array<i64: 16, 128>}, {transform_indices = @transform_2, window_bounds = array<i64: 8, 128>}]} {
    %c0_i32 = arith.constant 0 : i32
    %0 = arith.cmpi eq, %arg1, %c0_i32 : i32
    %1 = arith.extui %0 : i1 to i32
    %c0_i32_0 = arith.constant 0 : i32
    %2 = arith.cmpi ne, %1, %c0_i32_0 : i32
    scf.if %2 {
      %cst_10 = arith.constant 0.000000e+00 : f32
      %20 = vector.broadcast %cst_10 : f32 to vector<8x128xf32>
      %c0_11 = arith.constant 0 : index
      %c0_12 = arith.constant 0 : index
      %21 = vector.load %arg4[%c0_11, %c0_12] : memref<8x128xf32, #tpu.memory_space<vmem>>, vector<8x128xf32>
      tpu.vector_store %arg4[%c0_11, %c0_12], %20 {strides = array<i32>} : memref<8x128xf32, #tpu.memory_space<vmem>>, vector<8x128xf32>,
    } else {
    }
    %c0 = arith.constant 0 : index
    %c0_1 = arith.constant 0 : index
    %3 = vector.load %arg2[%c0, %c0_1] : memref<16x128xf32, #tpu.memory_space<vmem>>, vector<16x128xf32>
    %c0_2 = arith.constant 0 : index
    %c0_3 = arith.constant 0 : index
    %4 = vector.load %arg3[%c0_2, %c0_3] : memref<16x128xf32, #tpu.memory_space<vmem>>, vector<16x128xf32>
    %cst = arith.constant 0.000000e+00 : f32
    %5 = vector.broadcast %cst : f32 to vector<16x128xf32>
    %6 = arith.maximumf %3, %5 : vector<16x128xf32>
    %7 = arith.mulf %4, %3 : vector<16x128xf32>
    %8 = arith.subf %6, %7 : vector<16x128xf32>
    %9 = math.absf %3 : vector<16x128xf32>
    %cst_4 = arith.constant 0.000000e+00 : f32
    %10 = vector.broadcast %cst_4 : f32 to vector<16x128xf32>
    %11 = arith.subf %10, %9 : vector<16x128xf32>
    %12 = math.exp %11 : vector<16x128xf32>
    %13 = math.log1p %12 : vector<16x128xf32>
    %14 = arith.addf %8, %13 : vector<16x128xf32>
    %c0_5 = arith.constant 0 : index
    %c0_6 = arith.constant 0 : index
    %15 = vector.load %arg4[%c0_5, %c0_6] : memref<8x128xf32, #tpu.memory_space<vmem>>, vector<8x128xf32>
    %16 = vector.shape_cast %14 : vector<16x128xf32> to vector<2x8x128xf32>
    %cst_7 = arith.constant dense<0.000000e+00> : vector<8x128xf32>
    %17 = vector.multi_reduction <add>, %16, %cst_7 [0] : vector<2x8x128xf32> to vector<8x128xf32>
    %18 = arith.addf %15, %17 : vector<8x128xf32>
    %c0_8 = arith.constant 0 : index
    %c0_9 = arith.constant 0 : index
    %19 = vector.load %arg4[%c0_8, %c0_9] : memref<8x128xf32, #tpu.memory_space<vmem>>, vector<8x128xf32>
    tpu.vector_store %arg4[%c0_8, %c0_9], %18 {strides = array<i32>} : memref<8x128xf32, #tpu.memory_space<vmem>>, vector<8x128xf32>,
    return
  }
  func.func @transform_0(%arg0: i32, %arg1: i32) -> (i32, i32) {
    %c1_i32 = arith.constant 1 : i32
    %0 = arith.muli %arg0, %c1_i32 : i32
    %1 = arith.addi %0, %arg1 : i32
    %c0_i32 = arith.constant 0 : i32
    %2 = arith.minsi %1, %c0_i32 : i32
    %c0_i32_0 = arith.constant 0 : i32
    %c0_i32_1 = arith.constant 0 : i32
    return %2, %c0_i32_0 : i32, i32
  }
  func.func @transform_1(%arg0: i32, %arg1: i32) -> (i32, i32) {
    %c1_i32 = arith.constant 1 : i32
    %0 = arith.muli %arg0, %c1_i32 : i32
    %1 = arith.addi %0, %arg1 : i32
    %c0_i32 = arith.constant 0 : i32
    %2 = arith.minsi %1, %c0_i32 : i32
    %c0_i32_0 = arith.constant 0 : i32
    %c0_i32_1 = arith.constant 0 : i32
    return %2, %c0_i32_0 : i32, i32
  }
  func.func @transform_2(%arg0: i32, %arg1: i32) -> (i32, i32) {
    %c0_i32 = arith.constant 0 : i32
    %c0_i32_0 = arith.constant 0 : i32
    return %arg0, %c0_i32 : i32, i32
  }
}

</mosaic_0001>

<bundles_post_ra>
// kernel: tpu_custom_call.1
= control target key start
LH: loop header
LB: loop body
LE: loop exit
PB: predicated region body
PF: predicated region fallthrough
CT: control target
= control target key end

     0   :  { %7 = vsyncpa [#allocation3], 0  ;;  %s236_s0 = inlined_call_operand.hbm [shape: f32[16,128], index: 0, kind: input, shape index: {}]   ;;  %s237_s1 = inlined_call_operand.hbm [shape: f32[16,128], index: 1, kind: input, shape index: {}]   ;;  %s238_s2 = inlined_call_operand.hbm [shape: f32[8,128], index: 2, kind: output, shape index: {}]  }
   0x1   :  { %8 = vsyncpa [#allocation6], 0 }
   0x2   :  { %9 = vsyncpa [#allocation4], 0  ;;  %s207_s9 = smov [#allocation2]  }
   0x3   :  { %s21_s10 = sshll.u32 %s207_s9, 4  ;;  %s22_s10 = int_to_ptr.vmem [resolvable:$true] %s21_s10 }
   0x4   :  { %s149_s11 = scalar_lea.vmem %s22_s10, 256  ;;  %p154_p1 = scmp.lt.s32.totalorder %s22_s10, %s22_s10 }
   0x5   :  { %p150_p0 = scmp.ne.s32.totalorder %s22_s10, %s149_s11  ;;  %p155_p2 = scmp.lt.s32.totalorder %s149_s11, %s149_s11 }
   0x7   :  { %p156_p3 = por %p155_p2, %p154_p1 }
   0x9   :  { %p157_p4 = pnand %p156_p3, %p150_p0 }
   0xb   :  { %160 = shalt.err (!%p157_p4)
}
   0xc   :  { %s208_s12 = smov 128   ;;  %s209_s13 = smov 8  }
   0xd   :  { %27 = dma.hbm_to_vmem [thread:$0]  %s236_s0, 256, %s22_s10, [#allocation3], %s208_s12, %s208_s12, %s209_s13  }
   0xe   :  { %s210_s16 = smov [#allocation5]  }
   0xf   :  { %s39_s17 = sshll.u32 %s210_s16, 4  ;;  %s40_s17 = int_to_ptr.vmem [resolvable:$true] %s39_s17 }
  0x10   :  { %s169_s18 = scalar_lea.vmem %s40_s17, 256  ;;  %p174_p6 = scmp.lt.s32.totalorder %s40_s17, %s40_s17 }
  0x11   :  { %p170_p5 = scmp.ne.s32.totalorder %s40_s17, %s169_s18  ;;  %p175_p7 = scmp.lt.s32.totalorder %s169_s18, %s169_s18 }
  0x13   :  { %p176_p8 = por %p175_p7, %p174_p6 }
  0x15   :  { %p177_p9 = pnand %p176_p8, %p170_p5 }
  0x17   :  { %180 = shalt.err (!%p177_p9)
}
  0x18   :  { %45 = dma.hbm_to_vmem [thread:$0]  %s237_s1, 256, %s40_s17, [#allocation6], %s208_s12, %s208_s12, %s209_s13  }
  0x19   :  { %201 = dma.done.wait [#allocation3], 256  }
  0x1a   :  { %202 = vsyncadd [#allocation3], 4294967040 }
  0x1b   :  { %203 = dma.done.wait [#allocation6], 256  }
  0x1c   :  { %204 = vsyncadd [#allocation6], 4294967040  ;;  %v65_v0 = vld [vmem:[#allocation2] sm:$0xff]  ;;  %v66_v1 = vld [vmem:[#allocation2 + $0x8] sm:$0xff]  ;;  %s211_s0 = smov [#allocation7]  }
  0x1d   :  { %v75_v2 = vand.u32 2147483647, %v65_v0  ;;  %v76_v3 = vand.u32 2147483647, %v66_v1  ;;  %v67_v14 = vld [vmem:[#allocation5] sm:$0xff]  ;;  %v68_v15 = vld [vmem:[#allocation5 + $0x8] sm:$0xff] }
  0x1e   :  { %v69_v17 = vmax.f32 %v65_v0, 0.0  ;;  %v71_v18 = vmul.f32 %v67_v14, %v65_v0  ;;  %v70_v21 = vmax.f32 %v66_v1, 0.0  ;;  %v72_v22 = vmul.f32 %v68_v15, %v66_v1  ;;  %s113_s1 = sshll.u32 %s211_s0, 4  ;;  %s114_s1 = int_to_ptr.vmem [resolvable:$true] %s113_s1 }
  0x1f   :  { %v77_v4 = vsub.f32 0.0, %v75_v2  ;;  %v78_v5 = vsub.f32 0.0, %v76_v3  ;;  %s181_s21 = scalar_lea.vmem %s114_s1, 128  ;;  %p186_p11 = scmp.lt.s32.totalorder %s114_s1, %s114_s1 }
  0x20   :  { %v73_v26 = vsub.f32 %v69_v17, %v71_v18  ;;  %v74_v29 = vsub.f32 %v70_v21, %v72_v22  ;;  %p182_p10 = scmp.ne.s32.totalorder %s114_s1, %s181_s21  ;;  %p187_p12 = scmp.lt.s32.totalorder %s181_s21, %s181_s21 }
  0x21   :  { %v79_v6 = vmul.f32 1.442695, %v77_v4  ;;  %v81_v7 = vmul.f32 1.442695, %v78_v5 }
  0x22   :  { %p188_p13 = por %p187_p12, %p186_p11 }
  0x23   :  { %133 = vpow2.f32 %v79_v6 }
  0x24   :  { %135 = vpow2.f32 %v81_v7  ;;  %p189_p0 = pnand %p188_p13, %p182_p10 }
  0x30   :  { %v134_v8 = vpop.eup %133 }
  0x31   :  { %v136_v9 = vpop.eup %135  ;;  %v83_v10 = vadd.f32 1.0, %v134_v8  ;;  %v86_v12 = vmul.f32 -0.5, %v134_v8  ;;  %v89_v19 = vand.u32 2147483647, %v134_v8 }
  0x32   :  { %v92_v11 = vadd.f32 1.0, %v136_v9  ;;  %v95_v13 = vmul.f32 -0.5, %v136_v9  ;;  %v98_v23 = vand.u32 2147483647, %v136_v9 }
  0x33   :  { %137 = vlog2.f32 %v83_v10  ;;  %v87_v16 = vadd.f32 1.0, %v86_v12  ;;  %vm90_vm0 = vcmp.lt.f32.partialorder %v89_v19, 0.0004427343 }
  0x34   :  { %139 = vlog2.f32 %v92_v11  ;;  %v96_v20 = vadd.f32 1.0, %v95_v13  ;;  %vm99_vm1 = vcmp.lt.f32.partialorder %v98_v23, 0.0004427343 }
  0x35   :  { %v88_v24 = vmul.f32 %v134_v8, %v87_v16 }
  0x36   :  { %v97_v27 = vmul.f32 %v136_v9, %v96_v20 }
  0x40   :  { %v138_v25 = vpop.eup %137 }
  0x41   :  { %v140_v28 = vpop.eup %139  ;;  %v85_v30 = vmul.f32 0.6931472, %v138_v25 }
  0x42   :  { %v94_v31 = vmul.f32 0.6931472, %v140_v28 }
  0x43   :  { %v91_v32 = vsel %vm90_vm0, %v88_v24, %v85_v30 }
  0x44   :  { %v100_v33 = vsel %vm99_vm1, %v97_v27, %v94_v31  ;;  %v101_v34 = vadd.f32 %v91_v32, %v73_v26 }
  0x45   :  { %v102_v35 = vadd.f32 %v100_v33, %v74_v29 }
  0x47   :  { %v104_v36 = vadd.f32 %v102_v35, %v101_v34 }
  0x49   :  { %106 = vst [vmem:[#allocation7] sm:$0xff] %v104_v36 }
  0x4a   :  { %192 = shalt.err (!%p189_p0)
}
  0x4b   :  { %116 = dma.vmem_to_hbm [thread:$0]  %s114_s1, 128, %s238_s2, [#allocation4]  }
  0x4c   :  { %205 = dma.done.wait [#allocation4], 128  }
  0x4d   :  { %206 = vsyncadd [#allocation4], 4294967168 }
  0x4e   :  { %120 = vsyncpa [#allocation3], 1 }
  0x4f   :  { %121 = vsyncpa [#allocation6], 1 }
  0x50   :  { %122 = vsyncpa [#allocation4], 1 }

</bundles_post_ra>
